<compile_context>
chip_gen: v7x
topology: tpu7x:2x2x1
jax: 0.10.0
libtpu: 0.0.40
codegen_flags: <defaults>
</compile_context>

<pallas_src>
import functools

import jax
import jax.numpy as jnp
from jax import lax
from jax.experimental import pallas as pl
from jax.experimental.pallas import tpu as pltpu


def _convt_clamp_kernel(wk_ref, p_ref, b_ref, o_ref):
    # wk_ref: (4*Co, T*T*Ci)   phase-merged weights, one row per (phase, out-channel)
    # p_ref:  (T*T*Ci, M_pad)  im2col patches for one image, phase-grid index on lanes
    # b_ref:  (4*Co, 1)        bias per (phase, out-channel) row
    # o_ref:  (4*Co, M_pad)    output, phase-grid index on lanes (lane-dense stores)
    acc = lax.dot_general(
        wk_ref[...], p_ref[...],
        dimension_numbers=(((1,), (0,)), ((), ())),
        preferred_element_type=jnp.float32,
    )
    acc = acc + b_ref[...]                                    # lane-broadcast bias
    o_ref[...] = jnp.clip(acc, -0.5, 0.5).astype(o_ref.dtype)


@functools.partial(jax.jit, static_argnames=("stride",))
def conv_transpose_clamp(x_nchw, weight, bias, stride=2):
    """ConvTranspose2d(Ci->Co, K, stride) + clamp, PyTorch layouts.

    x_nchw: (N, Ci, H, W); weight: (Ci, Co, KH, KW); bias: (Co,).
    Assumes KH == KW and KH % stride == 0 (true for the module: K=4, s=2).
    """
    N, Ci, H, W = x_nchw.shape
    Ci_w, Co, KH, KW = weight.shape
    assert Ci == Ci_w and KH == KW and KH % stride == 0
    s = stride
    T = KH // s                          # taps per phase per spatial dim (=2)
    Ph, Pw = H + T - 1, W + T - 1        # phase-grid extent (=17)
    M = Ph * Pw                          # flattened phase grid (=289)
    M_pad = ((M + 127) // 128) * 128     # lane-dense lane count (=384)
    Ho, Wo = Ph * s, Pw * s              # == (H-1)*s + KH (=34)

    # ---- glue (data rearrangement only) -------------------------------------
    # NCHW -> NHWC, pad spatially by T-1 (replaces the zero-dilated buffer).
    x = jnp.transpose(x_nchw, (0, 2, 3, 1))
    x_pad = jnp.pad(x, ((0, 0), (T - 1, T - 1), (T - 1, T - 1), (0, 0)))

    # Shared im2col window: patches[n, (dh*T+dw)*Ci+ci, ph*Pw+pw] = x_pad[n, ph+dh, pw+dw, ci]
    taps = [x_pad[:, dh:dh + Ph, dw:dw + Pw, :]
            for dh in range(T) for dw in range(T)]            # each (N, Ph, Pw, Ci)
    pat = jnp.stack(taps, axis=1)                             # (N, T*T, Ph, Pw, Ci)
    pat = jnp.transpose(pat, (0, 1, 4, 2, 3)).reshape(N, T * T * Ci, M)
    pat = jnp.pad(pat, ((0, 0), (0, 0), (0, M_pad - M)))      # pad lanes to 128-mult

    # Phase-merged weights:
    #   wk[(rh*s+rw)*Co + co, (dh*T+dw)*Ci + ci] = weight[ci, co, (T-1-dh)*s + rh, (T-1-dw)*s + rw]
    w6 = weight.reshape(Ci, Co, T, s, T, s)[:, :, ::-1, :, ::-1, :]
    wk = jnp.transpose(w6, (3, 5, 1, 2, 4, 0)).reshape(s * s * Co, T * T * Ci)
    b2 = jnp.tile(bias, s * s).reshape(s * s * Co, 1)

    # ---- Pallas kernel: one (4Co x TTCi) @ (TTCi x M_pad) matmul + bias + clamp ----
    out = pl.pallas_call(
        _convt_clamp_kernel,
        out_shape=jax.ShapeDtypeStruct((N, s * s * Co, M_pad), jnp.float32),
        grid=(N,),
        in_specs=[
            pl.BlockSpec((s * s * Co, T * T * Ci), lambda n: (0, 0)),
            pl.BlockSpec((None, T * T * Ci, M_pad), lambda n: (n, 0, 0)),
            pl.BlockSpec((s * s * Co, 1), lambda n: (0, 0)),
        ],
        out_specs=pl.BlockSpec((None, s * s * Co, M_pad), lambda n: (n, 0, 0)),
        compiler_params=pltpu.CompilerParams(
            dimension_semantics=("parallel",)),
    )(wk, pat, b2)

    # ---- glue: phase layout -> NCHW ------------------------------------------
    y = out[:, :, :M].reshape(N, s, s, Co, Ph, Pw)            # (n, rh, rw, co, ph, pw)
    y = jnp.transpose(y, (0, 3, 4, 1, 5, 2)).reshape(N, Co, Ho, Wo)
    return y


def _reference(x_nchw, weight, bias, stride=2):
    """Pure-JAX reference: lhs-dilated conv == ConvTranspose2d, then clamp."""
    Ci, Co, KH, KW = weight.shape
    x = jnp.transpose(x_nchw, (0, 2, 3, 1))
    w_flip = jnp.transpose(weight[:, :, ::-1, ::-1], (2, 3, 0, 1))  # HWIO
    y = lax.conv_general_dilated(
        x, w_flip,
        window_strides=(1, 1),
        padding=[(KH - 1, KH - 1), (KW - 1, KW - 1)],
        lhs_dilation=(stride, stride),
        dimension_numbers=("NHWC", "HWIO", "NHWC"),
        precision=lax.Precision.HIGHEST,
    ) + bias.reshape(1, 1, 1, Co)
    y = jnp.clip(y, -0.5, 0.5)
    return jnp.transpose(y, (0, 3, 1, 2))


if __name__ == "__main__":
    # Small shapes consistent with the module: ConvTranspose2d(3 -> 8, k=4, s=2).
    N, Ci, H, W = 2, 3, 16, 16
    Co, KH, KW = 8, 4, 4

    key = jax.random.PRNGKey(0)
    kx, kw, kb = jax.random.split(key, 3)
    x = jax.random.normal(kx, (N, Ci, H, W), jnp.float32)
    fan_in = Ci * KH * KW
    bound = 1.0 / (fan_in ** 0.5)
    weight = jax.random.uniform(kw, (Ci, Co, KH, KW), jnp.float32, -bound, bound)
    bias = jax.random.uniform(kb, (Co,), jnp.float32, -bound, bound)

    out = conv_transpose_clamp(x, weight, bias, stride=2)
    out = jax.block_until_ready(out)

    ref = _reference(x, weight, bias, stride=2)
    assert out.shape == (N, Co, (H - 1) * 2 + KH, (W - 1) * 2 + KW), out.shape
    assert jnp.allclose(out, ref, atol=1e-5, rtol=1e-5), "mismatch vs reference"

    print("KERNEL_OK")
</pallas_src>

<mosaic_0001>
module attributes {stable_mosaic.version = 11 : i64} {
  func.func @_convt_clamp_kernel(%arg0: i32, %arg1: memref<32x12xf32, #tpu.memory_space<vmem>>, %arg2: memref<1x12x384xf32, #tpu.memory_space<vmem>>, %arg3: memref<32x1xf32, #tpu.memory_space<vmem>>, %arg4: memref<1x32x384xf32, #tpu.memory_space<vmem>>) attributes {dimension_semantics = [#tpu.dimension_semantics<parallel>], iteration_bounds = array<i64: 2>, scalar_prefetch = 0 : i64, scratch_operands = 0 : i64, tpu.core_type = #tpu.core_type<tc>, window_params = [{pipeline_mode = #tpu.pipeline_mode<synchronous>, transform_indices = @transform_0, window_bounds = array<i64: 32, 12>}, {transform_indices = @transform_1, window_bounds = array<i64: 1, 12, 384>}, {pipeline_mode = #tpu.pipeline_mode<synchronous>, transform_indices = @transform_2, window_bounds = array<i64: 32, 1>}, {transform_indices = @transform_3, window_bounds = array<i64: 1, 32, 384>}]} {
    %c0 = arith.constant 0 : index
    %c0_0 = arith.constant 0 : index
    %0 = vector.load %arg1[%c0, %c0_0] : memref<32x12xf32, #tpu.memory_space<vmem>>, vector<32x12xf32>
    %c0_1 = arith.constant 0 : index
    %c0_2 = arith.constant 0 : index
    %c0_3 = arith.constant 0 : index
    %1 = vector.load %arg2[%c0_1, %c0_2, %c0_3] : memref<1x12x384xf32, #tpu.memory_space<vmem>>, vector<1x12x384xf32>
    %2 = vector.shape_cast %1 : vector<1x12x384xf32> to vector<12x384xf32>
    %cst = arith.constant dense<0.000000e+00> : vector<32x384xf32>
    %3 = tpu.matmul %0, %2, %cst {dimension_numbers = #tpu.dot_dimension_numbers<[1], [0], [0], [1], [0, 0, 1, 1], [], []>} : vector<32x12xf32>, vector<12x384xf32>, vector<32x384xf32> -> vector<32x384xf32>
    %c0_4 = arith.constant 0 : index
    %c0_5 = arith.constant 0 : index
    %4 = vector.load %arg3[%c0_4, %c0_5] : memref<32x1xf32, #tpu.memory_space<vmem>>, vector<32x1xf32>
    %5 = vector.broadcast %4 : vector<32x1xf32> to vector<32x384xf32>
    %6 = arith.addf %3, %5 : vector<32x384xf32>
    %cst_6 = arith.constant -5.000000e-01 : f32
    %cst_7 = arith.constant 5.000000e-01 : f32
    %7 = vector.broadcast %cst_6 : f32 to vector<32x384xf32>
    %8 = arith.maximumf %7, %6 : vector<32x384xf32>
    %9 = vector.broadcast %cst_7 : f32 to vector<32x384xf32>
    %10 = arith.minimumf %9, %8 : vector<32x384xf32>
    %c0_8 = arith.constant 0 : index
    %c0_9 = arith.constant 0 : index
    %c0_10 = arith.constant 0 : index
    %11 = vector.load %arg4[%c0_8, %c0_9, %c0_10] : memref<1x32x384xf32, #tpu.memory_space<vmem>>, vector<1x32x384xf32>
    %12 = vector.shape_cast %11 : vector<1x32x384xf32> to vector<32x384xf32>
    %13 = vector.shape_cast %10 : vector<32x384xf32> to vector<1x32x384xf32>
    tpu.vector_store %arg4[%c0_8, %c0_9, %c0_10], %13 {strides = array<i32>} : memref<1x32x384xf32, #tpu.memory_space<vmem>>, vector<1x32x384xf32>,
    return
  }
  func.func @transform_0(%arg0: i32) -> (i32, i32) {
    %c0_i32 = arith.constant 0 : i32
    %c0_i32_0 = arith.constant 0 : i32
    %c0_i32_1 = arith.constant 0 : i32
    return %c0_i32, %c0_i32_0 : i32, i32
  }
  func.func @transform_1(%arg0: i32) -> (i32, i32, i32) {
    %c0_i32 = arith.constant 0 : i32
    %c0_i32_0 = arith.constant 0 : i32
    %c0_i32_1 = arith.constant 0 : i32
    return %arg0, %c0_i32, %c0_i32_0 : i32, i32, i32
  }
  func.func @transform_2(%arg0: i32) -> (i32, i32) {
    %c0_i32 = arith.constant 0 : i32
    %c0_i32_0 = arith.constant 0 : i32
    %c0_i32_1 = arith.constant 0 : i32
    return %c0_i32, %c0_i32_0 : i32, i32
  }
  func.func @transform_3(%arg0: i32) -> (i32, i32, i32) {
    %c0_i32 = arith.constant 0 : i32
    %c0_i32_0 = arith.constant 0 : i32
    %c0_i32_1 = arith.constant 0 : i32
    return %arg0, %c0_i32, %c0_i32_0 : i32, i32, i32
  }
}

</mosaic_0001>

<bundles_post_ra>
// kernel: tile.0
= control target key start
LH: loop header
LB: loop body
LE: loop exit
PB: predicated region body
PF: predicated region fallthrough
CT: control target
= control target key end

     0   :  { %s66_s8 = smov 125   ;;  %vm7_vm0 = vcmask 7168   ;;  %s67_s11 = smov 126   ;;  %s117_s0 = inlined_call_operand.vmem [shape: f32[4,8], index: 0, kind: input, shape index: {}]   ;;  %s118_s1 = inlined_call_operand.vmem [shape: f32[32,1], index: 1, kind: output, shape index: {}]  }
   0x1   :  { %v4_v0 = vld [vmem:[%s117_s0] sm:$0xf]  ;;  %s65_s0 = smov 127   ;;  %s68_s12 = smov 124  }
   0x2   :  { %5 = vst [vmem:[#allocation0] sm:$0xf] %v4_v0  ;;  %s69_s13 = smov 123   ;;  %s70_s14 = smov 122  }
   0x3   :  { %s71_s15 = smov 121  }
   0x9   :  { %v9_v1 = vld [vmem:[#allocation0] sm:$0xf]  }
   0xa   :  { %v21_v2 = vld [vmem:[#allocation0] sm:$0xf]   ;;  %10 = vrot.lane.b32.xlu0 %v9_v1, %s65_s0 }
   0xb   :  { %22 = vrot.lane.b32.xlu1 %v21_v2, %s66_s8  ;;  %v15_v3 = vld [vmem:[#allocation0] sm:$0xf]  }
   0xc   :  { %v27_v4 = vld [vmem:[#allocation0] sm:$0xf]  }
   0xd   :  { %v6_v5 = vld [vmem:[#allocation0] sm:$0xf]  }
   0xe   :  { %8 = vst.msk [vmem:[%s118_s1] ss:$8 sm:$0xf] %vm7_vm0, %v6_v5   ;;  %16 = vrot.lane.b32.xlu0 %v15_v3, %s67_s11  ;;  %v33_v6 = vld [vmem:[#allocation0] sm:$0xf]  }
   0xf   :  { %28 = vrot.lane.b32.xlu1 %v27_v4, %s68_s12  ;;  %v39_v7 = vld [vmem:[#allocation0] sm:$0xf]  }
  0x10   :  { %v45_v8 = vld [vmem:[#allocation0] sm:$0xf]  }
  0x12   :  { %34 = vrot.lane.b32.xlu0 %v33_v6, %s69_s13 }
  0x13   :  { %40 = vrot.lane.b32.xlu1 %v39_v7, %s70_s14 }
  0x16   :  { %46 = vrot.lane.b32.xlu0 %v45_v8, %s71_s15 }
  0x7c   :  { %v11_v9 = vpop.permute.xlu0 %10  }
  0x7d   :  { %v23_v10 = vpop.permute.xlu1 %22   ;;  %51 = vst.msk [vmem:[%s118_s1 + $0x1] ss:$8 sm:$0xf] %vm7_vm0, %v11_v9  }
  0x7e   :  { %53 = vst.msk [vmem:[%s118_s1 + $0x3] ss:$8 sm:$0xf] %vm7_vm0, %v23_v10  }
  0x80   :  { %v17_v11 = vpop.permute.xlu0 %16  }
  0x81   :  { %v29_v12 = vpop.permute.xlu1 %28   ;;  %52 = vst.msk [vmem:[%s118_s1 + $0x2] ss:$8 sm:$0xf] %vm7_vm0, %v17_v11  }
  0x82   :  { %54 = vst.msk [vmem:[%s118_s1 + $0x4] ss:$8 sm:$0xf] %vm7_vm0, %v29_v12  }
  0x84   :  { %v35_v13 = vpop.permute.xlu0 %34  }
  0x85   :  { %v41_v14 = vpop.permute.xlu1 %40   ;;  %55 = vst.msk [vmem:[%s118_s1 + $0x5] ss:$8 sm:$0xf] %vm7_vm0, %v35_v13  }
  0x86   :  { %56 = vst.msk [vmem:[%s118_s1 + $0x6] ss:$8 sm:$0xf] %vm7_vm0, %v41_v14  }
  0x88   :  { %v47_v15 = vpop.permute.xlu0 %46  }
  0x89   :  { %57 = vst.msk [vmem:[%s118_s1 + $0x7] ss:$8 sm:$0xf] %vm7_vm0, %v47_v15  }

// kernel: tile.8
= control target key start
LH: loop header
LB: loop body
LE: loop exit
PB: predicated region body
PF: predicated region fallthrough
CT: control target
= control target key end

     0   :  { %2 = vsyncpa [#allocation1], 0  ;;  %s44_s6 = smov [#allocation0]   ;;  %s70_s0 = inlined_call_operand.hbm [shape: f32[8], index: 0, kind: input, shape index: {}]   ;;  %s71_s1 = inlined_call_operand.vmem [shape: f32[4,8], index: 1, kind: output, shape index: {}]  }
   0x1   :  { %s9_s7 = sshll.u32 %s44_s6, 4  ;;  %s20_s10 = scalar_lea.hbm %s70_s0, 16  ;;  %s10_s7 = int_to_ptr.vmem [resolvable:$true] %s9_s7 }
   0x2   :  { %p21_p0 = scmp.ne.s32.totalorder %s70_s0, %s20_s10  ;;  %p24_p1 = scmp.lt.u32.totalorder %s20_s10, %s70_s0 }
   0x4   :  { %p26_p2 = pnand %p24_p1, %p21_p0 }
   0x6   :  { %29 = shalt.err (!%p26_p2)
}
   0x7   :  { %s30_s15 = scalar_lea.vmem %s10_s7, 16  ;;  %s34_s16 = scalar_lea.vmem %s10_s7, 32 }
   0x8   :  { %p31_p3 = scmp.ne.s32.totalorder %s10_s7, %s30_s15  ;;  %p35_p4 = scmp.lt.s32.totalorder %s10_s7, %s10_s7 }
   0x9   :  { %p36_p5 = scmp.lt.s32.totalorder %s34_s16, %s30_s15 }
   0xb   :  { %p37_p6 = por %p36_p5, %p35_p4 }
   0xd   :  { %p38_p7 = pnand %p37_p6, %p31_p3 }
   0xf   :  { %41 = shalt.err (!%p38_p7)
}
  0x10   :  { %12 = dma.hbm_to_vmem [thread:$0]  %s70_s0, 16, %s10_s7, [#allocation1]  }
  0x11   :  { %42 = dma.done.wait [#allocation1], 16  }
  0x12   :  { %43 = vsyncadd [#allocation1], 4294967280  ;;  %v16_v0 = vld [vmem:[#allocation0] ss:$0 sm:$0xff] }
  0x13   :  { %17 = vst [vmem:[%s71_s1] sm:$0xf] %v16_v0 }
  0x14   :  { %18 = vsyncpa [#allocation1], 1 }

// kernel: conv_transpose_clamp.1
= control target key start
LH: loop header
LB: loop body
LE: loop exit
PB: predicated region body
PF: predicated region fallthrough
CT: control target
= control target key end

     0   :  { %s601_s12 = smov 0   ;;  %s676_s0 = inlined_call_operand.vmem [shape: f32[32,12], index: 0, kind: input, shape index: {}]   ;;  %s677_s1 = inlined_call_operand.vmem [shape: f32[2,12,384], index: 1, kind: input, shape index: {}]   ;;  %s678_s2 = inlined_call_operand.vmem [shape: f32[32,1], index: 2, kind: input, shape index: {}]   ;;  %s679_s3 = inlined_call_operand.vmem [shape: f32[2,32,384], index: 3, kind: output, shape index: {}]  }
   0x1 LB: > { %s493_s13 = sadd.s32 4294967295, %s576_s12   ;;  %p497_p0 = scmp.ge.s32.totalorder %s576_s12, 1  ;;  %s576_s12 = sphi %s601_s12, %s13_s12  }
   0x2   : > { %p137_p1 = scmp.lt.s32.totalorder %s576_s12, 3 }
   0x4   : > { %p138_p2 = pnand %p497_p0, %p137_p1 }
   0x5   : > { %p161_p3 = scmp.lt.s32.totalorder (!%p138_p2), %s493_s13, 1  ;;  %v578_v0 = vmov (!%p138_p2), 0.0   ;;  %v579_v1 = vmov (!%p138_p2), 0   ;;  %v183_v2 = vld [vmem:[%s678_s2 + $0x10] sm:$0xff] (!%p138_p2)  ;;  %vm218_vm0 = vcmask (!%p138_p2), 1043456   ;;  %v181_v3 = vld [vmem:[%s678_s2] sm:$0xff] (!%p138_p2) }
   0x6   : > { %141 = sbr.rel (%p138_p2) target bundleno = 250 (0xfa), region = 32  ;;  %292 = vmatprep.mubr.f32.mxu0 (!%p138_p2), %v578_v0  ;;  %310 = vmatprep.mubr.f32.mxu1 (!%p138_p2), %v578_v0  ;;  %v184_v4 = vld [vmem:[%s678_s2 + $0x18] sm:$0xff] (!%p138_p2)  ;;  %v182_v5 = vld [vmem:[%s678_s2 + $0x8] sm:$0xff] (!%p138_p2)  ;;  %vm580_vm1 = vmmov (!%p138_p2), 1   ;;  %v171_v16 = vld [vmem:[%s676_s0] sm:$0xff] (!%p138_p2)  ;;  %vm205_vm3 = vcmask (!%p138_p2), 97280  }
   0x7   : > { %569 = vset.pattern.permute.xlu1 (!%p138_p2), %v579_v1  ;;  %568 = vset.pattern.permute.xlu0 (!%p138_p2), %v579_v1  ;;  %vm627_vm2 = vmpackc.low (!%p138_p2), %vm218_vm0, %vm580_vm1  ;;  %v174_v17 = vld [vmem:[%s676_s0 + $0x18] sm:$0xff] (!%p138_p2)  ;;  %v172_v18 = vld [vmem:[%s676_s0 + $0x8] sm:$0xff] (!%p138_p2) }
   0x8   : > { %197 = vperm.xlu1 (!%p138_p2), %569, %v183_v2   ;;  %187 = vperm.xlu0 (!%p138_p2), %568, %v181_v3   ;;  %v173_v19 = vld [vmem:[%s676_s0 + $0x10] sm:$0xff] (!%p138_p2) }
   0xc   : > { %202 = vperm.xlu1 (!%p138_p2), %569, %v184_v4   ;;  %192 = vperm.xlu0 (!%p138_p2), %568, %v182_v5  }
   0xd   : > { %s683_s13 = smov (!%p161_p3, %s493_s13), 1 }
   0xe   : > { %s555_s18 = smul.u32 48, %s683_s13 }
   0xf   : > { %s556_s7 = smul.u32 96, %s683_s13 }
  0x10   : > { %s165_s25 = scalar_lea.vmem %s677_s1, %s555_s18 }
  0x11   : > { %v176_v7 = vld [vmem:[%s165_s25 + $0x8] sm:$0xff]  ;;  %v179_v8 = vld [vmem:[%s165_s25 + $0x20] sm:$0xf]  ;;  %v178_v11 = vld [vmem:[%s165_s25 + $0x18] sm:$0xf]  ;;  %s659_s10 = scalar_lea.vmem %s679_s3, %s556_s7 }
  0x12   : > { %v175_v9 = vld [vmem:[%s165_s25] sm:$0xff]  ;;  %v541_v10 = vpack.c.bf16 %v179_v8, %v176_v7  ;;  %v177_v12 = vld [vmem:[%s165_s25 + $0x10] sm:$0xff]  ;;  %v180_v13 = vld [vmem:[%s165_s25 + $0x28] sm:$0xf] }
  0x13   : > { %v544_v14 = vpack.c.bf16 %v178_v11, %v175_v9  ;;  %v547_v15 = vpack.c.bf16 %v180_v13, %v177_v12 }
  0x14   : > { %543 = vmatprep.subr.msk.bf16.mxu0 %vm627_vm2, %v541_v10  ;;  %553 = vmatprep.subr.msk.bf16.mxu1 %vm627_vm2, %v541_v10 }
  0x15   : > { %546 = vmatpush1.bf16.msk.msra.mxu0 %vm627_vm2, %v544_v14  ;;  %554 = vmatpush1.bf16.msk.msra.mxu1 %vm627_vm2, %v544_v14 }
  0x16   : > { %549 = vmatprep.subr.msk.bf16.mxu1 %vm627_vm2, %v547_v15 }
  0x18   : > { %502 = vmatmul.mubr.msk.f32.vlgmr.msra.gmra.mrb[0].mxu0 %vm205_vm3, %v171_v16  ;;  %505 = vmatmul.mubr.msk.f32.vlgmr.msra.gmra.mrb[0].mxu1 %vm205_vm3, %v174_v17 }
  0x19   : > { %552 = vmatpush3.bf16.msk.msra.mxu1 %vm627_vm2, %v547_v15  ;;  %298 = vmatprep.mubr.f32.mxu0 %v578_v0 }
  0x1a   : > { %535 = vmatprep.mubr.msk.f32.mxu1 %vm205_vm3, %v171_v16 }
  0x1c   : > { %503 = vmatmul.mubr.msk.f32.gmra.mrb[2].mxu0 %vm205_vm3, %v172_v18  ;;  %536 = vmatmul.mubr.msk.f32.vlgmr.msra.gmra.mrb[2].mxu1 %vm205_vm3, %v172_v18 }
  0x1d   : > { %304 = vmatprep.mubr.f32.mxu0 %v578_v0  ;;  %538 = vmatprep.mubr.msk.f32.mxu1 %vm205_vm3, %v173_v19 }
  0x20   : > { %504 = vmatmul.mubr.msk.f32.gmra.mrb[4].mxu0 %vm205_vm3, %v173_v19  ;;  %539 = vmatmul.mubr.msk.f32.gmra.mrb[4].mxu1 %vm205_vm3, %v174_v17 }
  0x87   : > { %v198_v20 = vpop.permute.xlu1 %197  ;;  %v188_v21 = vpop.permute.xlu0 %187 }
  0x8b   : > { %v203_v22 = vpop.permute.xlu1 %202  ;;  %v193_v31 = vpop.permute.xlu0 %192 }
  0xeb   : > { %v294_v23 = vpop.f32.mrb[0].mxu0  ;;  %v312_v24 = vpop.f32.mrb[0].mxu1 }
  0xec   : > { %v313_v25 = vadd.f32 %v312_v24, %v203_v22  ;;  %v295_v26 = vadd.f32 %v294_v23, %v188_v21  ;;  %v296_v27 = vpop.f32.mrb[1].mxu0  ;;  %v314_v28 = vpop.f32.mrb[1].mxu1 }
  0xed   : > { %v297_v29 = vadd.f32 %v296_v27, %v188_v21  ;;  %v315_v30 = vadd.f32 %v314_v28, %v203_v22 }
  0xee   : > { %v520_v32 = vclamps-f32 %v313_v25, 0.5  ;;  %v511_v33 = vclamps-f32 %v295_v26, 0.5 }
  0xef   : > { %v512_v34 = vclamps-f32 %v297_v29, 0.5  ;;  %v521_v35 = vclamps-f32 %v315_v30, 0.5  ;;  %v300_v36 = vpop.f32.mrb[2].mxu0  ;;  %v537_v37 = vpop.f32.mrb[2].mxu1 }
  0xf0   : > { %435 = vst [vmem:[%s659_s10 + $0x48] sm:$0xff] %v520_v32  ;;  %426 = vst [vmem:[%s659_s10] sm:$0xff] %v511_v33  ;;  %v301_v38 = vadd.f32 %v300_v36, %v193_v31  ;;  %v389_v39 = vadd.f32 %v537_v37, %v193_v31  ;;  %v302_v40 = vpop.f32.mrb[3].mxu0  ;;  %v383_v41 = vpop.f32.mrb[3].mxu1 }
  0xf1   : > { %427 = vst [vmem:[%s659_s10 + $0x8] sm:$0xff] %v512_v34  ;;  %436 = vst [vmem:[%s659_s10 + $0x50] sm:$0xff] %v521_v35  ;;  %v303_v42 = vadd.f32 %v302_v40, %v193_v31  ;;  %v384_v43 = vadd.f32 %v383_v41, %v188_v21 }
  0xf2   : > { %v514_v44 = vclamps-f32 %v301_v38, 0.5  ;;  %v516_v45 = vclamps-f32 %v389_v39, 0.5 }
  0xf3   : > { %v515_v46 = vclamps-f32 %v303_v42, 0.5  ;;  %v513_v47 = vclamps-f32 %v384_v43, 0.5  ;;  %v306_v48 = vpop.f32.mrb[4].mxu0  ;;  %v540_v49 = vpop.f32.mrb[4].mxu1 }
  0xf4   : > { %429 = vst [vmem:[%s659_s10 + $0x18] sm:$0xff] %v514_v44  ;;  %431 = vst [vmem:[%s659_s10 + $0x28] sm:$0xff] %v516_v45  ;;  %v307_v50 = vadd.f32 %v306_v48, %v198_v20  ;;  %v399_v51 = vadd.f32 %v540_v49, %v203_v22  ;;  %v308_v52 = vpop.f32.mrb[5].mxu0  ;;  %v393_v53 = vpop.f32.mrb[5].mxu1 }
  0xf5   : > { %430 = vst [vmem:[%s659_s10 + $0x20] sm:$0xff] %v515_v46  ;;  %428 = vst [vmem:[%s659_s10 + $0x10] sm:$0xff] %v513_v47  ;;  %v309_v54 = vadd.f32 %v308_v52, %v198_v20  ;;  %v394_v55 = vadd.f32 %v393_v53, %v198_v20 }
  0xf6   : > { %v517_v56 = vclamps-f32 %v307_v50, 0.5  ;;  %v522_v57 = vclamps-f32 %v399_v51, 0.5 }
  0xf7   : > { %v518_v58 = vclamps-f32 %v309_v54, 0.5  ;;  %v519_v59 = vclamps-f32 %v394_v55, 0.5 }
  0xf8   : > { %432 = vst [vmem:[%s659_s10 + $0x30] sm:$0xff] %v517_v56  ;;  %437 = vst [vmem:[%s659_s10 + $0x58] sm:$0xff] %v522_v57 }
  0xf9   : > { %433 = vst [vmem:[%s659_s10 + $0x38] sm:$0xff] %v518_v58  ;;  %434 = vst [vmem:[%s659_s10 + $0x40] sm:$0xff] %v519_v59 }
  0xfa PF: > { %s13_s12 = sadd.s32 1, %s576_s12  }
  0xfb   : > { %p10_p4 = scmp.ge.s32.totalorder %s13_s12, 4  }
  0xfd   :  { %12 = sbr.rel (!%p10_p4) target bundleno = 1 (0x1), region = 62 }

</bundles_post_ra>
